<compile_context>
chip_gen: v7x
topology: tpu7x:2x2x1
jax: 0.10.0
libtpu: 0.0.40
codegen_flags: <defaults>
</compile_context>

<pallas_src>
import jax
import jax.numpy as jnp
import numpy as np
from jax.experimental import pallas as pl
from jax.experimental.pallas import tpu as pltpu


LN_EPS = 1e-12  # nn.LayerNorm(d_model, eps=1e-12) in the PyTorch module


def create_sinusoidal_embeddings(n_pos, dim):
    """Same math as the PyTorch helper, returns a (n_pos, dim) float32 array."""
    position_enc = np.array(
        [[pos / np.power(10000, 2 * (j // 2) / dim) for j in range(dim)]
         for pos in range(n_pos)],
        dtype=np.float64,
    )
    out = np.zeros((n_pos, dim), dtype=np.float32)
    out[:, 0::2] = np.sin(position_enc[:, 0::2])
    out[:, 1::2] = np.cos(position_enc[:, 1::2])
    return jnp.asarray(out, dtype=jnp.float32)


# -------------------- Pallas kernel: bias add + LayerNorm --------------------
def _embeddings_kernel(x_ref, bias_ref, gamma_ref, beta_ref, o_ref):
    # x_ref:    (TB, TS, D) tile of the input
    # bias_ref: (TS, D)     precomputed pos+modality bias (batch-invariant)
    # gamma_ref/beta_ref: (1, 1, D) LayerNorm affine params
    x = x_ref[...].astype(jnp.float32)                              # (TB, TS, D)
    h = x + bias_ref[...].astype(jnp.float32)[None, :, :]           # fused bias add

    # Two-pass (mean -> centered -> var) kept for numerical safety with
    # eps=1e-12; the kernel is HBM-bound so the extra XLU pass is hidden.
    mean = jnp.mean(h, axis=-1, keepdims=True)
    centered = h - mean
    var = jnp.mean(centered * centered, axis=-1, keepdims=True)     # biased, matches torch
    y = centered * jax.lax.rsqrt(var + LN_EPS)
    y = (y * gamma_ref[...].astype(jnp.float32)
         + beta_ref[...].astype(jnp.float32))                       # (1,1,D) broadcasts natively

    o_ref[...] = y.astype(o_ref.dtype)


# -------------------- generation-aware tiling --------------------
def _hw_config():
    """Pick streaming tile target + VMEM budget + TC count per TPU generation."""
    kind = ""
    try:
        kind = jax.devices()[0].device_kind.lower()
    except Exception:
        pass
    if "v7" in kind:
        # 3.2 TB/s HBM, 64 MiB physical VMEM, 2 TensorCores per chip.
        return {"bytes_target": 6 << 20, "vmem_limit": 44 << 20, "two_tc": True}
    if "v6" in kind:
        # 1.4 TB/s HBM, 128 MiB physical VMEM, 1 TensorCore.
        return {"bytes_target": 4 << 20, "vmem_limit": 64 << 20, "two_tc": False}
    # v5e / v5p / unknown: conservative defaults (16 MiB scoped default raised to 32).
    return {"bytes_target": 2 << 20, "vmem_limit": 32 << 20, "two_tc": False}


def _choose_tiles(B, S, D, itemsize, bytes_target, two_tc):
    """Pick (TB, TS) so one x tile is ~bytes_target, respecting sublane packing."""
    sublane = 8 if itemsize >= 4 else 16                 # bf16/fp8 pack along sublanes
    rows_target = max(sublane, bytes_target // max(D * itemsize, 1))
    if S <= rows_target:
        ts = S                                           # full seq dim in one block
    else:
        ts = max(sublane, (rows_target // sublane) * sublane)
    tb = max(1, min(B, rows_target // max(ts, 1)))

    if two_tc:
        # Guarantee >= 2 grid steps so both v7x TensorCores get work.
        steps = pl.cdiv(B, tb) * pl.cdiv(S, ts)
        if steps < 2:
            if B >= 2:
                tb = pl.cdiv(B, 2)
            elif S >= 2 * sublane:
                half = pl.cdiv(S, 2)
                ts_new = max(sublane, pl.cdiv(half, sublane) * sublane)
                if ts_new >= S:
                    ts_new = max(sublane, (S // 2 // sublane) * sublane)
                ts = ts_new
    return tb, ts


def embeddings_forward(x, pos_table, mod_table, gamma, beta,
                       language_len, vision_len):
    """x: (B, S, D). Returns (B, S, D)."""
    B, S, D = x.shape
    assert S == 2 * language_len + vision_len, "seq length must match modality layout"

    # Glue (cheap, batch-invariant) stays in plain JAX: fuse position and
    # modality embeddings into one (S, D) bias so the kernel gets one shared
    # input stream instead of two.  Bias kept in x.dtype to halve DMA bytes for
    # bf16 models; the kernel upcasts to fp32.
    modality_ids = jnp.asarray(
        [0] * language_len + [1] * language_len + [2] * vision_len, dtype=jnp.int32)
    bias = (pos_table[:S, :].astype(jnp.float32)
            + jnp.take(mod_table, modality_ids, axis=0).astype(jnp.float32)
            ).astype(x.dtype)                                       # (S, D)

    gamma3 = gamma.reshape(1, 1, D).astype(x.dtype)
    beta3 = beta.reshape(1, 1, D).astype(x.dtype)

    hw = _hw_config()
    TB, TS = _choose_tiles(B, S, D, x.dtype.itemsize, hw["bytes_target"], hw["two_tc"])

    # Grid: seq tiles OUTER, batch tiles INNER -> bias block index (s, 0) is
    # constant along the inner axis, so Pallas fetches each bias tile once per
    # seq tile instead of once per (b, s) step.
    grid = (pl.cdiv(S, TS), pl.cdiv(B, TB))

    # TODO(synk): real configs should use D % 128 == 0 (lane-dense vst); for tiny
    # D (e.g. 32) masked stores waste lanes and a plain-XLA fallback is preferable.
    out = pl.pallas_call(
        _embeddings_kernel,
        out_shape=jax.ShapeDtypeStruct((B, S, D), x.dtype),
        grid_spec=pltpu.PrefetchScalarGridSpec(
            num_scalar_prefetch=0,
            grid=grid,
            in_specs=[
                pl.BlockSpec((TB, TS, D), lambda s, b: (b, s, 0)),   # x tile
                pl.BlockSpec((TS, D), lambda s, b: (s, 0)),          # fused bias (inner-invariant)
                pl.BlockSpec((1, 1, D), lambda s, b: (0, 0, 0)),     # gamma
                pl.BlockSpec((1, 1, D), lambda s, b: (0, 0, 0)),     # beta
            ],
            out_specs=pl.BlockSpec((TB, TS, D), lambda s, b: (b, s, 0)),
        ),
        compiler_params=pltpu.CompilerParams(
            dimension_semantics=("parallel", "parallel"),
            vmem_limit_bytes=hw["vmem_limit"]),
    )(x, bias, gamma3, beta3)
    return out


# -------------------- reference (pure JAX) for sanity check --------------------
def embeddings_ref(x, pos_table, mod_table, gamma, beta, language_len, vision_len):
    B, S, D = x.shape
    pos_emb = pos_table[:S, :]
    modality_ids = jnp.asarray(
        [0] * language_len + [1] * language_len + [2] * vision_len, dtype=jnp.int32)
    mod_emb = jnp.take(mod_table, modality_ids, axis=0)
    h = x.astype(jnp.float32) + pos_emb[None] + mod_emb[None]
    mean = jnp.mean(h, axis=-1, keepdims=True)
    var = jnp.mean((h - mean) ** 2, axis=-1, keepdims=True)
    y = (h - mean) / jnp.sqrt(var + LN_EPS)
    return (y * gamma.reshape(1, 1, D) + beta.reshape(1, 1, D)).astype(x.dtype)


if __name__ == "__main__":
    # Small shapes consistent with the module (d_model=128 keeps the lane dim
    # dense, per the perf review):
    d_model = 128
    language_len = 2
    vision_len = 4
    batch = 2
    seq = 2 * language_len + vision_len        # 8
    dropout = 0.1                              # inference-mode: identity
    sinusoidal_pos_embds = True

    key = jax.random.PRNGKey(0)
    k_x, k_mod, k_pos = jax.random.split(key, 3)

    max_position_embeddings = 2 * language_len + vision_len

    # Parameter init (deterministic, in-script):
    if sinusoidal_pos_embds:
        pos_table = create_sinusoidal_embeddings(max_position_embeddings, d_model)
    else:
        pos_table = jax.random.normal(k_pos, (max_position_embeddings, d_model),
                                      dtype=jnp.float32)
    mod_table = jax.random.normal(k_mod, (3, d_model), dtype=jnp.float32)  # nn.Embedding ~ N(0,1)
    gamma = jnp.ones((d_model,), dtype=jnp.float32)   # LayerNorm default weight
    beta = jnp.zeros((d_model,), dtype=jnp.float32)   # LayerNorm default bias

    x = jax.random.normal(k_x, (batch, seq, d_model), dtype=jnp.float32)

    out = embeddings_forward(x, pos_table, mod_table, gamma, beta,
                             language_len, vision_len)
    out = jax.block_until_ready(out)

    ref = embeddings_ref(x, pos_table, mod_table, gamma, beta,
                         language_len, vision_len)
    # dtype-aware tolerance (fp32 here; bf16 inputs would need looser tolerance)
    tol = 1e-5 if x.dtype == jnp.float32 else 2e-2
    np.testing.assert_allclose(np.asarray(out), np.asarray(ref), rtol=tol, atol=tol)

    # TODO(synk): dropout is omitted (inference mode); add pltpu.prng_* masking if
    # training-mode dropout is ever required.
    print("KERNEL_OK")
</pallas_src>

<mosaic_0001>
module attributes {stable_mosaic.version = 11 : i64} {
  func.func @_embeddings_kernel(%arg0: i32, %arg1: i32, %arg2: memref<2x8x128xf32, #tpu.memory_space<vmem>>, %arg3: memref<8x128xf32, #tpu.memory_space<vmem>>, %arg4: memref<1x1x128xf32, #tpu.memory_space<vmem>>, %arg5: memref<1x1x128xf32, #tpu.memory_space<vmem>>, %arg6: memref<2x8x128xf32, #tpu.memory_space<vmem>>) attributes {dimension_semantics = [#tpu.dimension_semantics<parallel>, #tpu.dimension_semantics<parallel>], iteration_bounds = array<i64: 1, 1>, scalar_prefetch = 0 : i64, scratch_operands = 0 : i64, tpu.core_type = #tpu.core_type<tc>, window_params = [{transform_indices = @transform_0, window_bounds = array<i64: 2, 8, 128>}, {transform_indices = @transform_1, window_bounds = array<i64: 8, 128>}, {pipeline_mode = #tpu.pipeline_mode<synchronous>, transform_indices = @transform_2, window_bounds = array<i64: 1, 1, 128>}, {pipeline_mode = #tpu.pipeline_mode<synchronous>, transform_indices = @transform_3, window_bounds = array<i64: 1, 1, 128>}, {transform_indices = @transform_4, window_bounds = array<i64: 2, 8, 128>}]} {
    %c0 = arith.constant 0 : index
    %c0_0 = arith.constant 0 : index
    %c0_1 = arith.constant 0 : index
    %0 = vector.load %arg2[%c0, %c0_0, %c0_1] : memref<2x8x128xf32, #tpu.memory_space<vmem>>, vector<2x8x128xf32>
    %c0_2 = arith.constant 0 : index
    %c0_3 = arith.constant 0 : index
    %1 = vector.load %arg3[%c0_2, %c0_3] : memref<8x128xf32, #tpu.memory_space<vmem>>, vector<8x128xf32>
    %2 = vector.shape_cast %1 : vector<8x128xf32> to vector<1x8x128xf32>
    %3 = vector.broadcast %2 : vector<1x8x128xf32> to vector<2x8x128xf32>
    %4 = arith.addf %0, %3 : vector<2x8x128xf32>
    %cst = arith.constant dense<0.000000e+00> : vector<2x8xf32>
    %5 = vector.multi_reduction <add>, %4, %cst [2] : vector<2x8x128xf32> to vector<2x8xf32>
    %6 = vector.shape_cast %5 : vector<2x8xf32> to vector<2x8x1xf32>
    %cst_4 = arith.constant 1.280000e+02 : f32
    %7 = vector.broadcast %cst_4 : f32 to vector<2x8x1xf32>
    %8 = arith.divf %6, %7 : vector<2x8x1xf32>
    %9 = vector.broadcast %8 : vector<2x8x1xf32> to vector<2x8x128xf32>
    %10 = arith.subf %4, %9 : vector<2x8x128xf32>
    %11 = arith.mulf %10, %10 : vector<2x8x128xf32>
    %cst_5 = arith.constant dense<0.000000e+00> : vector<2x8xf32>
    %12 = vector.multi_reduction <add>, %11, %cst_5 [2] : vector<2x8x128xf32> to vector<2x8xf32>
    %13 = vector.shape_cast %12 : vector<2x8xf32> to vector<2x8x1xf32>
    %cst_6 = arith.constant 1.280000e+02 : f32
    %14 = vector.broadcast %cst_6 : f32 to vector<2x8x1xf32>
    %15 = arith.divf %13, %14 : vector<2x8x1xf32>
    %cst_7 = arith.constant 9.99999996E-13 : f32
    %16 = vector.broadcast %cst_7 : f32 to vector<2x8x1xf32>
    %17 = arith.addf %15, %16 : vector<2x8x1xf32>
    %18 = math.rsqrt %17 : vector<2x8x1xf32>
    %19 = vector.broadcast %18 : vector<2x8x1xf32> to vector<2x8x128xf32>
    %20 = arith.mulf %10, %19 : vector<2x8x128xf32>
    %c0_8 = arith.constant 0 : index
    %c0_9 = arith.constant 0 : index
    %c0_10 = arith.constant 0 : index
    %21 = vector.load %arg4[%c0_8, %c0_9, %c0_10] : memref<1x1x128xf32, #tpu.memory_space<vmem>>, vector<1x1x128xf32>
    %22 = vector.broadcast %21 : vector<1x1x128xf32> to vector<2x8x128xf32>
    %23 = arith.mulf %20, %22 : vector<2x8x128xf32>
    %c0_11 = arith.constant 0 : index
    %c0_12 = arith.constant 0 : index
    %c0_13 = arith.constant 0 : index
    %24 = vector.load %arg5[%c0_11, %c0_12, %c0_13] : memref<1x1x128xf32, #tpu.memory_space<vmem>>, vector<1x1x128xf32>
    %25 = vector.broadcast %24 : vector<1x1x128xf32> to vector<2x8x128xf32>
    %26 = arith.addf %23, %25 : vector<2x8x128xf32>
    %c0_14 = arith.constant 0 : index
    %c0_15 = arith.constant 0 : index
    %c0_16 = arith.constant 0 : index
    %27 = vector.load %arg6[%c0_14, %c0_15, %c0_16] : memref<2x8x128xf32, #tpu.memory_space<vmem>>, vector<2x8x128xf32>
    tpu.vector_store %arg6[%c0_14, %c0_15, %c0_16], %26 {strides = array<i32>} : memref<2x8x128xf32, #tpu.memory_space<vmem>>, vector<2x8x128xf32>,
    return
  }
  func.func @transform_0(%arg0: i32, %arg1: i32) -> (i32, i32, i32) {
    %c0_i32 = arith.constant 0 : i32
    %c0_i32_0 = arith.constant 0 : i32
    return %arg1, %arg0, %c0_i32 : i32, i32, i32
  }
  func.func @transform_1(%arg0: i32, %arg1: i32) -> (i32, i32) {
    %c0_i32 = arith.constant 0 : i32
    %c0_i32_0 = arith.constant 0 : i32
    return %arg0, %c0_i32 : i32, i32
  }
  func.func @transform_2(%arg0: i32, %arg1: i32) -> (i32, i32, i32) {
    %c0_i32 = arith.constant 0 : i32
    %c0_i32_0 = arith.constant 0 : i32
    %c0_i32_1 = arith.constant 0 : i32
    %c0_i32_2 = arith.constant 0 : i32
    return %c0_i32, %c0_i32_0, %c0_i32_1 : i32, i32, i32
  }
  func.func @transform_3(%arg0: i32, %arg1: i32) -> (i32, i32, i32) {
    %c0_i32 = arith.constant 0 : i32
    %c0_i32_0 = arith.constant 0 : i32
    %c0_i32_1 = arith.constant 0 : i32
    %c0_i32_2 = arith.constant 0 : i32
    return %c0_i32, %c0_i32_0, %c0_i32_1 : i32, i32, i32
  }
  func.func @transform_4(%arg0: i32, %arg1: i32) -> (i32, i32, i32) {
    %c0_i32 = arith.constant 0 : i32
    %c0_i32_0 = arith.constant 0 : i32
    return %arg1, %arg0, %c0_i32 : i32, i32, i32
  }
}

</mosaic_0001>

<bundles_post_ra>
// kernel: tpu_custom_call.1
= control target key start
LH: loop header
LB: loop body
LE: loop exit
PB: predicated region body
PF: predicated region fallthrough
CT: control target
= control target key end

     0   :  { %9 = vsyncpa [#allocation3], 0  ;;  %s271_s0 = inlined_call_operand.hbm [shape: f32[2,8,128], index: 0, kind: input, shape index: {}]   ;;  %s272_s1 = inlined_call_operand.hbm [shape: f32[8,128], index: 1, kind: input, shape index: {}]   ;;  %s273_s2 = inlined_call_operand.vmem [shape: f32[1,1,128], index: 2, kind: input, shape index: {}]   ;;  %s274_s3 = inlined_call_operand.vmem [shape: f32[1,1,128], index: 3, kind: input, shape index: {}]   ;;  %s275_s4 = inlined_call_operand.hbm [shape: f32[2,8,128], index: 4, kind: output, shape index: {}]  }
   0x1   :  { %10 = vsyncpa [#allocation6], 0 }
   0x2   :  { %11 = vsyncpa [#allocation4], 0  ;;  %s193_s15 = smov [#allocation2]   ;;  %s121_s19 = scalar_lea.hbm %s271_s0, 256 }
   0x3   :  { %s17_s16 = sshll.u32 %s193_s15, 4  ;;  %p122_p0 = scmp.ne.s32.totalorder %s271_s0, %s121_s19  ;;  %s18_s16 = int_to_ptr.vmem [resolvable:$true] %s17_s16 }
   0x4   :  { %p125_p1 = scmp.lt.u32.totalorder %s121_s19, %s271_s0 }
   0x6   :  { %p127_p2 = pnand %p125_p1, %p122_p0 }
   0x8   :  { %130 = shalt.err (!%p127_p2)
}
   0x9   :  { %s131_s24 = scalar_lea.vmem %s18_s16, 256  ;;  %p136_p4 = scmp.lt.s32.totalorder %s18_s16, %s18_s16 }
   0xa   :  { %p132_p3 = scmp.ne.s32.totalorder %s18_s16, %s131_s24  ;;  %p137_p5 = scmp.lt.s32.totalorder %s131_s24, %s131_s24 }
   0xc   :  { %p138_p6 = por %p137_p5, %p136_p4 }
   0xe   :  { %p139_p7 = pnand %p138_p6, %p132_p3 }
  0x10   :  { %142 = shalt.err (!%p139_p7)
}
  0x11   :  { %s194_s25 = smov 128   ;;  %s195_s26 = smov 8  }
  0x12   :  { %23 = dma.hbm_to_vmem [thread:$0]  %s271_s0, 256, %s18_s16, [#allocation3], %s194_s25, %s194_s25, %s195_s26  }
  0x13   :  { %s196_s29 = smov [#allocation5]   ;;  %s143_s7 = scalar_lea.hbm %s272_s1, 128 }
  0x14   :  { %s30_s30 = sshll.u32 %s196_s29, 4  ;;  %p144_p8 = scmp.ne.s32.totalorder %s272_s1, %s143_s7  ;;  %s31_s30 = int_to_ptr.vmem [resolvable:$true] %s30_s30 }
  0x15   :  { %p147_p9 = scmp.lt.u32.totalorder %s143_s7, %s272_s1 }
  0x17   :  { %p149_p10 = pnand %p147_p9, %p144_p8 }
  0x19   :  { %152 = shalt.err (!%p149_p10)
}
  0x1a   :  { %s153_s12 = scalar_lea.vmem %s31_s30, 128  ;;  %p158_p12 = scmp.lt.s32.totalorder %s31_s30, %s31_s30 }
  0x1b   :  { %p154_p11 = scmp.ne.s32.totalorder %s31_s30, %s153_s12  ;;  %p159_p13 = scmp.lt.s32.totalorder %s153_s12, %s153_s12 }
  0x1d   :  { %p160_p0 = por %p159_p13, %p158_p12 }
  0x1f   :  { %p161_p1 = pnand %p160_p0, %p154_p11 }
  0x21   :  { %164 = shalt.err (!%p161_p1)
}
  0x22   :  { %33 = dma.hbm_to_vmem [thread:$0]  %s272_s1, 128, %s31_s30, [#allocation6]  }
  0x23   :  { %187 = dma.done.wait [#allocation3], 256  }
  0x24   :  { %188 = vsyncadd [#allocation3], 4294967040 }
  0x25   :  { %189 = dma.done.wait [#allocation6], 128  }
  0x26   :  { %190 = vsyncadd [#allocation6], 4294967168  ;;  %v44_v0 = vld [vmem:[#allocation2] sm:$0xff]  ;;  %v46_v1 = vld [vmem:[#allocation5] sm:$0xff]  ;;  %s197_s17 = smov [#allocation7]  }
  0x27   :  { %v45_v2 = vld [vmem:[#allocation2 + $0x8] sm:$0xff]  ;;  %v47_v3 = vadd.f32 %v46_v1, %v44_v0  ;;  %v110_v20 = vld [vmem:[%s273_s2] ss:$0 sm:$0xff]  ;;  %s97_s18 = sshll.u32 %s197_s17, 4  ;;  %s98_s18 = int_to_ptr.vmem [resolvable:$true] %s97_s18 }
  0x28   :  { %v48_v4 = vadd.f32 %v46_v1, %v45_v2  ;;  %v111_v22 = vld [vmem:[%s274_s3] ss:$0 sm:$0xff]  ;;  %s165_s19 = scalar_lea.vmem %s98_s18, 256  ;;  %p170_p3 = scmp.lt.s32.totalorder %s98_s18, %s98_s18 }
  0x29   :  { %49 = vadd.xlane.f32.xlu0 %v47_v3  ;;  %p166_p2 = scmp.ne.s32.totalorder %s98_s18, %s165_s19  ;;  %p171_p4 = scmp.lt.s32.totalorder %s165_s19, %s165_s19 }
  0x2b   :  { %p172_p5 = por %p171_p4, %p170_p3 }
  0x2d   :  { %51 = vadd.xlane.f32.xlu0 %v48_v4  ;;  %p173_p6 = pnand %p172_p5, %p166_p2 }
  0xb6   :  { %v50_v5 = vpop.xlane.xlu0 %49 }
  0xb7   :  { %v54_v6 = vmul.f32 0.0078125, %v50_v5 }
  0xb9   :  { %v56_v7 = vsub.f32 %v47_v3, %v54_v6 }
  0xba   :  { %v52_v8 = vpop.xlane.xlu0 %51 }
  0xbb   :  { %v55_v9 = vmul.f32 0.0078125, %v52_v8  ;;  %v58_v10 = vmul.f32 %v56_v7, %v56_v7 }
  0xbd   :  { %v57_v11 = vsub.f32 %v48_v4, %v55_v9  ;;  %60 = vadd.xlane.f32.xlu1 %v58_v10 }
  0xbf   :  { %v59_v12 = vmul.f32 %v57_v11, %v57_v11 }
  0xc1   :  { %62 = vadd.xlane.f32.xlu1 %v59_v12 }
 0x14a   :  { %v61_v13 = vpop.xlane.xlu1 %60 }
 0x14b   :  { %v64_v14 = vmul.f32 0.0078125, %v61_v13 }
 0x14d   :  { %v66_v15 = vadd.f32 1e-12, %v64_v14 }
 0x14e   :  { %v63_v16 = vpop.xlane.xlu1 %62 }
 0x14f   :  { %117 = vrsqrt.f32 %v66_v15  ;;  %v65_v17 = vmul.f32 0.0078125, %v63_v16 }
 0x151   :  { %v67_v18 = vadd.f32 1e-12, %v65_v17 }
 0x153   :  { %119 = vrsqrt.f32 %v67_v18 }
 0x159   :  { %v118_v19 = vpop.eup %117 }
 0x15a   :  { %v70_v21 = vmul.f32 %v118_v19, %v56_v7 }
 0x15c   :  { %v79_v23 = vmul.f32 %v110_v20, %v70_v21 }
 0x15d   :  { %v120_v24 = vpop.eup %119 }
 0x15e   :  { %v71_v25 = vmul.f32 %v120_v24, %v57_v11  ;;  %v88_v26 = vadd.f32 %v111_v22, %v79_v23 }
 0x160   :  { %v80_v27 = vmul.f32 %v110_v20, %v71_v25  ;;  %90 = vst [vmem:[#allocation7] sm:$0xff] %v88_v26 }
 0x162   :  { %v89_v28 = vadd.f32 %v111_v22, %v80_v27 }
 0x164   :  { %91 = vst [vmem:[#allocation7 + $0x8] sm:$0xff] %v89_v28 }
 0x165   :  { %176 = shalt.err (!%p173_p6)
}
 0x166   :  { %s177_s20 = scalar_lea.hbm %s275_s4, 256 }
 0x167   :  { %p178_p7 = scmp.ne.s32.totalorder %s275_s4, %s177_s20  ;;  %p181_p8 = scmp.lt.u32.totalorder %s177_s20, %s275_s4 }
 0x169   :  { %p183_p9 = pnand %p181_p8, %p178_p7 }
 0x16b   :  { %186 = shalt.err (!%p183_p9)
}
 0x16c   :  { %103 = dma.vmem_to_hbm [thread:$0]  %s98_s18, 256, %s275_s4, [#allocation4], %s194_s25, %s194_s25, %s195_s26  }
 0x16d   :  { %191 = dma.done.wait [#allocation4], 256  }
 0x16e   :  { %192 = vsyncadd [#allocation4], 4294967040 }
 0x16f   :  { %107 = vsyncpa [#allocation3], 1 }
 0x170   :  { %108 = vsyncpa [#allocation6], 1 }
 0x171   :  { %109 = vsyncpa [#allocation4], 1 }

</bundles_post_ra>
